<compile_context>
chip_gen: v7x
topology: tpu7x:2x2x1
jax: 0.10.0
libtpu: 0.0.40
codegen_flags: <defaults>
</compile_context>

<pallas_src>
import jax
import jax.numpy as jnp
from jax.experimental import pallas as pl
from jax.experimental.pallas import tpu as pltpu


def gelu_kernel(x_ref, o_ref):
    x = x_ref[...].astype(jnp.float32)
    # 0.5 * x * (1 + tanh(sqrt(2/pi) * (x + 0.044715 * x^3)))
    # Factored: inner = c * x * (1 + 0.044715 * x*x)  (one fewer VALU mul;
    # tanh goes to the otherwise-idle EUP slot).
    c = jnp.float32(0.7978845608028654)  # sqrt(2/pi)
    x_sq = x * x
    inner = c * x * (jnp.float32(1.0) + jnp.float32(0.044715) * x_sq)
    y = jnp.float32(0.5) * x * (jnp.float32(1.0) + jnp.tanh(inner))
    o_ref[...] = y.astype(o_ref.dtype)


def gelu_pallas(x, *, row_tile=None):
    """Elementwise tanh-GELU. x: (..., H). Computed in a single Pallas kernel."""
    orig_shape = x.shape
    H = orig_shape[-1]
    x2 = x.reshape(-1, H)
    R = x2.shape[0]

    if row_tile is None:
        # Target ~512 rows/block (f32, H=768 -> ~1.5 MiB per buffer;
        # ~6 MiB double-buffered in+out: fits v5e's 16 MiB scoped VMEM and
        # v7x's smaller VMEM while being big enough to reach HBM roofline).
        r8 = ((R + 7) // 8) * 8  # keep sublane-aligned block shape
        row_tile = min(512, r8)

    grid = (pl.cdiv(R, row_tile),)  # no host-side padding; tail block masked

    nelems = R * H
    cost = pl.CostEstimate(
        flops=10 * nelems,
        transcendentals=nelems,
        bytes_accessed=2 * nelems * x.dtype.itemsize,
    )

    out = pl.pallas_call(
        gelu_kernel,
        out_shape=jax.ShapeDtypeStruct((R, H), x.dtype),
        grid_spec=pl.GridSpec(
            grid=grid,
            in_specs=[pl.BlockSpec((row_tile, H), lambda i: (i, 0))],
            out_specs=pl.BlockSpec((row_tile, H), lambda i: (i, 0)),
        ),
        compiler_params=pltpu.CompilerParams(
            dimension_semantics=("parallel",),  # row axis shards across TCs
        ),
        cost_estimate=cost,
    )(x2)

    return out.reshape(orig_shape)


def gelu_ref(x):
    xf = x.astype(jnp.float32)
    c = jnp.sqrt(jnp.float32(2.0) / jnp.pi)
    return (0.5 * xf * (1.0 + jnp.tanh(c * (xf + 0.044715 * xf ** 3)))).astype(x.dtype)


if __name__ == "__main__":
    key = jax.random.PRNGKey(0)
    k1, k2 = jax.random.split(key)

    # Matches the module's example usage shape: x = torch.rand(2, 4, 768).
    # Use normal() so negative inputs are exercised too.
    x = jax.random.normal(k1, (2, 4, 768), dtype=jnp.float32)
    y = gelu_pallas(x)
    jax.block_until_ready(y)
    y_ref = gelu_ref(x)
    assert y.shape == x.shape and y.dtype == x.dtype
    assert jnp.allclose(y, y_ref, atol=1e-5, rtol=1e-5)

    # Ragged row count (R=15 not a multiple of the block) to exercise the
    # masked tail-block path that replaced the old jnp.pad / slice.
    x_odd = jax.random.normal(k2, (3, 5, 768), dtype=jnp.float32)
    y_odd = gelu_pallas(x_odd)
    jax.block_until_ready(y_odd)
    assert jnp.allclose(y_odd, gelu_ref(x_odd), atol=1e-5, rtol=1e-5)

    print("KERNEL_OK")
</pallas_src>

<mosaic_0001>
module attributes {stable_mosaic.version = 11 : i64} {
  func.func @gelu_kernel(%arg0: i32, %arg1: memref<8x768xf32, #tpu.memory_space<vmem>>, %arg2: memref<8x768xf32, #tpu.memory_space<vmem>>) attributes {dimension_semantics = [#tpu.dimension_semantics<parallel>], iteration_bounds = array<i64: 1>, scalar_prefetch = 0 : i64, scratch_operands = 0 : i64, tpu.core_type = #tpu.core_type<tc>, window_params = [{transform_indices = @transform_0, window_bounds = array<i64: 8, 768>}, {transform_indices = @transform_1, window_bounds = array<i64: 8, 768>}]} {
    %c0 = arith.constant 0 : index
    %c0_0 = arith.constant 0 : index
    %0 = vector.load %arg1[%c0, %c0_0] : memref<8x768xf32, #tpu.memory_space<vmem>>, vector<8x768xf32>
    %1 = arith.mulf %0, %0 : vector<8x768xf32>
    %cst = arith.constant 0.797884583 : f32
    %2 = vector.broadcast %cst : f32 to vector<8x768xf32>
    %3 = arith.mulf %2, %0 : vector<8x768xf32>
    %cst_1 = arith.constant 4.471500e-02 : f32
    %4 = vector.broadcast %cst_1 : f32 to vector<8x768xf32>
    %5 = arith.mulf %4, %1 : vector<8x768xf32>
    %cst_2 = arith.constant 1.000000e+00 : f32
    %6 = vector.broadcast %cst_2 : f32 to vector<8x768xf32>
    %7 = arith.addf %6, %5 : vector<8x768xf32>
    %8 = arith.mulf %3, %7 : vector<8x768xf32>
    %cst_3 = arith.constant 5.000000e-01 : f32
    %9 = vector.broadcast %cst_3 : f32 to vector<8x768xf32>
    %10 = arith.mulf %9, %0 : vector<8x768xf32>
    %11 = math.tanh %8 : vector<8x768xf32>
    %cst_4 = arith.constant 1.000000e+00 : f32
    %12 = vector.broadcast %cst_4 : f32 to vector<8x768xf32>
    %13 = arith.addf %12, %11 : vector<8x768xf32>
    %14 = arith.mulf %10, %13 : vector<8x768xf32>
    %c0_5 = arith.constant 0 : index
    %c0_6 = arith.constant 0 : index
    %15 = vector.load %arg2[%c0_5, %c0_6] : memref<8x768xf32, #tpu.memory_space<vmem>>, vector<8x768xf32>
    tpu.vector_store %arg2[%c0_5, %c0_6], %14 {strides = array<i32>} : memref<8x768xf32, #tpu.memory_space<vmem>>, vector<8x768xf32>,
    return
  }
  func.func @transform_0(%arg0: i32) -> (i32, i32) {
    %c0_i32 = arith.constant 0 : i32
    %c0_i32_0 = arith.constant 0 : i32
    return %arg0, %c0_i32 : i32, i32
  }
  func.func @transform_1(%arg0: i32) -> (i32, i32) {
    %c0_i32 = arith.constant 0 : i32
    %c0_i32_0 = arith.constant 0 : i32
    return %arg0, %c0_i32 : i32, i32
  }
}

</mosaic_0001>

<bundles_post_ra>
// kernel: tpu_custom_call.1
= control target key start
LH: loop header
LB: loop body
LE: loop exit
PB: predicated region body
PF: predicated region fallthrough
CT: control target
= control target key end

     0   :  { %6 = vsyncpa [#allocation3], 0  ;;  %s200_s0 = inlined_call_operand.hbm [shape: f32[8,768], index: 0, kind: input, shape index: {}]   ;;  %s201_s1 = inlined_call_operand.hbm [shape: f32[8,768], index: 1, kind: output, shape index: {}]  }
   0x1   :  { %7 = vsyncpa [#allocation4], 0  ;;  %s164_s6 = smov [#allocation2]   ;;  %s116_s10 = scalar_lea.hbm %s200_s0, 768 }
   0x2   :  { %s14_s7 = sshll.u32 %s164_s6, 4  ;;  %p117_p0 = scmp.ne.s32.totalorder %s200_s0, %s116_s10  ;;  %s15_s7 = int_to_ptr.vmem [resolvable:$true] %s14_s7 }
   0x3   :  { %p120_p1 = scmp.lt.u32.totalorder %s116_s10, %s200_s0 }
   0x5   :  { %p122_p2 = pnand %p120_p1, %p117_p0 }
   0x7   :  { %125 = shalt.err (!%p122_p2)
}
   0x8   :  { %s126_s15 = scalar_lea.vmem %s15_s7, 768  ;;  %p131_p4 = scmp.lt.s32.totalorder %s15_s7, %s15_s7 }
   0x9   :  { %p127_p3 = scmp.ne.s32.totalorder %s15_s7, %s126_s15  ;;  %p132_p5 = scmp.lt.s32.totalorder %s126_s15, %s126_s15 }
   0xb   :  { %p133_p6 = por %p132_p5, %p131_p4 }
   0xd   :  { %p134_p7 = pnand %p133_p6, %p127_p3 }
   0xf   :  { %137 = shalt.err (!%p134_p7)
}
  0x10   :  { %17 = dma.hbm_to_vmem [thread:$0]  %s200_s0, 768, %s15_s7, [#allocation3]  }
  0x11   :  { %160 = dma.done.wait [#allocation3], 768  }
  0x12   :  { %161 = vsyncadd [#allocation3], 4294966528  ;;  %v21_v0 = vld [vmem:[#allocation2] sm:$0xff]  ;;  %v22_v1 = vld [vmem:[#allocation2 + $0x8] sm:$0xff]  ;;  %s165_s0 = smov [#allocation5]  }
  0x13   :  { %v23_v2 = vld [vmem:[#allocation2 + $0x10] sm:$0xff]  ;;  %v27_v3 = vmul.f32 %v21_v0, %v21_v0  ;;  %v28_v4 = vmul.f32 %v22_v1, %v22_v1  ;;  %v24_v5 = vld [vmem:[#allocation2 + $0x18] sm:$0xff]  ;;  %v25_v6 = vld [vmem:[#allocation2 + $0x20] sm:$0xff]  ;;  %v33_v7 = vmul.f32 0.7978846, %v21_v0  ;;  %v57_v36 = vmul.f32 0.5, %v21_v0 }
  0x14   :  { %v29_v8 = vmul.f32 %v23_v2, %v23_v2  ;;  %v26_v9 = vld [vmem:[#allocation2 + $0x28] sm:$0xff]  ;;  %v34_v11 = vmul.f32 0.7978846, %v22_v1  ;;  %v30_v13 = vmul.f32 %v24_v5, %v24_v5  ;;  %v35_v14 = vmul.f32 0.7978846, %v23_v2  ;;  %s93_s18 = sshll.u32 %s165_s0, 4  ;;  %s94_s18 = int_to_ptr.vmem [resolvable:$true] %s93_s18 }
  0x15   :  { %v39_v10 = vmul.f32 0.044715, %v27_v3  ;;  %v40_v12 = vmul.f32 0.044715, %v28_v4  ;;  %v31_v16 = vmul.f32 %v25_v6, %v25_v6  ;;  %v36_v19 = vmul.f32 0.7978846, %v24_v5  ;;  %p143_p9 = scmp.lt.s32.totalorder %s94_s18, %s94_s18 }
  0x16   :  { %v41_v15 = vmul.f32 0.044715, %v29_v8  ;;  %v42_v20 = vmul.f32 0.044715, %v30_v13  ;;  %v37_v22 = vmul.f32 0.7978846, %v25_v6  ;;  %v32_v24 = vmul.f32 %v26_v9, %v26_v9 }
  0x17   :  { %v45_v17 = vadd.f32 1.0, %v39_v10  ;;  %v46_v18 = vadd.f32 1.0, %v40_v12  ;;  %v43_v23 = vmul.f32 0.044715, %v31_v16  ;;  %v38_v30 = vmul.f32 0.7978846, %v26_v9 }
  0x18   :  { %v47_v21 = vadd.f32 1.0, %v41_v15  ;;  %v48_v27 = vadd.f32 1.0, %v42_v20  ;;  %v44_v31 = vmul.f32 0.044715, %v32_v24  ;;  %v58_v38 = vmul.f32 0.5, %v22_v1  ;;  %s138_s19 = scalar_lea.vmem %s94_s18, 768 }
  0x19   :  { %v51_v25 = vmul.f32 %v45_v17, %v33_v7  ;;  %v52_v26 = vmul.f32 %v46_v18, %v34_v11  ;;  %v49_v29 = vadd.f32 1.0, %v43_v23  ;;  %v59_v41 = vmul.f32 0.5, %v23_v2  ;;  %p139_p8 = scmp.ne.s32.totalorder %s94_s18, %s138_s19  ;;  %p144_p10 = scmp.lt.s32.totalorder %s138_s19, %s138_s19 }
  0x1a   :  { %v53_v28 = vmul.f32 %v47_v21, %v35_v14  ;;  %v54_v32 = vmul.f32 %v48_v27, %v36_v19  ;;  %v50_v34 = vadd.f32 1.0, %v44_v31  ;;  %v60_v44 = vmul.f32 0.5, %v24_v5 }
  0x1b   :  { %104 = vtanh.f32 %v51_v25  ;;  %v55_v33 = vmul.f32 %v49_v29, %v37_v22  ;;  %v61_v48 = vmul.f32 0.5, %v25_v6  ;;  %v62_v52 = vmul.f32 0.5, %v26_v9  ;;  %p145_p11 = por %p144_p10, %p143_p9 }
  0x1c   :  { %106 = vtanh.f32 %v52_v26  ;;  %v56_v35 = vmul.f32 %v50_v34, %v38_v30 }
  0x1d   :  { %108 = vtanh.f32 %v53_v28  ;;  %p146_p12 = pnand %p145_p11, %p139_p8 }
  0x1e   :  { %110 = vtanh.f32 %v54_v32 }
  0x1f   :  { %112 = vtanh.f32 %v55_v33 }
  0x20   :  { %114 = vtanh.f32 %v56_v35 }
  0x25   :  { %v105_v37 = vpop.eup %104 }
  0x26   :  { %v107_v39 = vpop.eup %106  ;;  %v69_v40 = vadd.f32 1.0, %v105_v37 }
  0x27   :  { %v109_v42 = vpop.eup %108  ;;  %v70_v43 = vadd.f32 1.0, %v107_v39 }
  0x28   :  { %v111_v45 = vpop.eup %110  ;;  %v75_v46 = vmul.f32 %v69_v40, %v57_v36  ;;  %v71_v47 = vadd.f32 1.0, %v109_v42 }
  0x29   :  { %v113_v49 = vpop.eup %112  ;;  %v76_v50 = vmul.f32 %v70_v43, %v58_v38  ;;  %v72_v51 = vadd.f32 1.0, %v111_v45 }
  0x2a   :  { %v115_v53 = vpop.eup %114  ;;  %81 = vst [vmem:[#allocation5] sm:$0xff] %v75_v46  ;;  %v77_v54 = vmul.f32 %v71_v47, %v59_v41  ;;  %v73_v55 = vadd.f32 1.0, %v113_v49 }
  0x2b   :  { %82 = vst [vmem:[#allocation5 + $0x8] sm:$0xff] %v76_v50  ;;  %v78_v56 = vmul.f32 %v72_v51, %v60_v44  ;;  %v74_v57 = vadd.f32 1.0, %v115_v53 }
  0x2c   :  { %83 = vst [vmem:[#allocation5 + $0x10] sm:$0xff] %v77_v54  ;;  %v79_v58 = vmul.f32 %v73_v55, %v61_v48 }
  0x2d   :  { %84 = vst [vmem:[#allocation5 + $0x18] sm:$0xff] %v78_v56  ;;  %v80_v59 = vmul.f32 %v74_v57, %v62_v52 }
  0x2e   :  { %85 = vst [vmem:[#allocation5 + $0x20] sm:$0xff] %v79_v58 }
  0x2f   :  { %86 = vst [vmem:[#allocation5 + $0x28] sm:$0xff] %v80_v59 }
  0x30   :  { %149 = shalt.err (!%p146_p12)
}
  0x31   :  { %s150_s22 = scalar_lea.hbm %s201_s1, 768 }
  0x32   :  { %p151_p13 = scmp.ne.s32.totalorder %s201_s1, %s150_s22  ;;  %p154_p0 = scmp.lt.u32.totalorder %s150_s22, %s201_s1 }
  0x34   :  { %p156_p1 = pnand %p154_p0, %p151_p13 }
  0x36   :  { %159 = shalt.err (!%p156_p1)
}
  0x37   :  { %96 = dma.vmem_to_hbm [thread:$0]  %s94_s18, 768, %s201_s1, [#allocation4]  }
  0x38   :  { %162 = dma.done.wait [#allocation4], 768  }
  0x39   :  { %163 = vsyncadd [#allocation4], 4294966528 }
  0x3a   :  { %100 = vsyncpa [#allocation3], 1 }
  0x3b   :  { %101 = vsyncpa [#allocation4], 1 }

</bundles_post_ra>
